<compile_context>
chip_gen: v7x
topology: tpu7x:2x2x1
jax: 0.10.0
libtpu: 0.0.40
codegen_flags: <defaults>
</compile_context>

<pallas_src>
import functools

import jax
import jax.numpy as jnp
from jax.experimental import pallas as pl
from jax.experimental.pallas import tpu as pltpu


def _round_up(x, m):
    return (x + m - 1) // m * m


# --------------------------------------------------------------------------- #
# Kernel
# --------------------------------------------------------------------------- #
def attention_gru_cell_kernel(fact_ref, c_ref, g_ref, wf_ref, wc_ref, b_ref,
                              out_ref, *, hidden_size, gate_stride,
                              compute_dtype):
    """Fused AttentionGRUCell forward for one batch tile.

    fact_ref: (TB, I)            input facts
    c_ref   : (TB, H)            previous state
    g_ref   : (TB, min(H,128))   f32 attention gate, pre-broadcast over lanes
    wf_ref  : (I, W3)  bf16      fact-slab column blocks: [Wr^T | W^T | 0 ]
    wc_ref  : (H, W3)  bf16      c-slab    column blocks: [Ur^T | 0   | U^T]
    b_ref   : (1, W3)  f32       bias row:                [Ur_b | W_b | 0 ]
    out_ref : (TB, H)

    Column blocks are `gate_stride` lanes apart: gate_stride == H when
    3*H <= 128 (all gates packed in one 128-lane block), else round_up(H,128).
    """
    H, S = hidden_size, gate_stride

    c_in = c_ref[...]
    # Two lane-dense MXU calls (bf16 operands, f32 accumulation). Biases are
    # added in f32 outside the matmul (no bf16 rounding of the bias terms).
    z = (jnp.dot(fact_ref[...].astype(compute_dtype), wf_ref[...],
                 preferred_element_type=jnp.float32)
         + jnp.dot(c_in.astype(compute_dtype), wc_ref[...],
                   preferred_element_type=jnp.float32)
         + b_ref[...])

    r = jax.nn.sigmoid(z[:, 0:H])                              # Wr.f + Ur.c + b_Ur
    h_tilda = jnp.tanh(z[:, S:S + H] + r * z[:, 2 * S:2 * S + H])

    c32 = c_in.astype(jnp.float32)
    g = g_ref[...]
    if g.shape[-1] != H:          # H > 128: broadcast from the first lane column
        g = g[:, :1]
    # c_new = g*h + (1-g)*c  ==  c + g*(h - c)
    out_ref[...] = (c32 + g * (h_tilda - c32)).astype(out_ref.dtype)


# --------------------------------------------------------------------------- #
# One-time parameter preparation (hoisted out of the per-step call)
# --------------------------------------------------------------------------- #
def prepare_params(params, input_size, hidden_size, *,
                   compute_dtype=jnp.bfloat16):
    """Fuse Wr/Ur/W/U into pre-transposed fact/c slabs + an f32 bias row."""
    H = hidden_size
    S = H if 3 * H <= 128 else _round_up(H, 128)    # gate column stride
    W3 = _round_up(3 * S, 128)

    wf = jnp.zeros((input_size, W3), jnp.float32)
    wf = wf.at[:, 0:H].set(params["Wr"].T)                   # r-path : Wr.fact
    wf = wf.at[:, S:S + H].set(params["W_w"].T)              # h-path : W.fact
    wc = jnp.zeros((H, W3), jnp.float32)
    wc = wc.at[:, 0:H].set(params["Ur_w"].T)                 # r-path : Ur.c
    wc = wc.at[:, 2 * S:2 * S + H].set(params["U"].T)        # h-path : U.c
    bias = jnp.zeros((1, W3), jnp.float32)
    bias = bias.at[0, 0:H].set(params["Ur_b"])
    bias = bias.at[0, S:S + H].set(params["W_b"])

    return {"wf": wf.astype(compute_dtype), "wc": wc.astype(compute_dtype),
            "bias": bias, "gate_stride": S, "W3": W3,
            "input_size": input_size, "hidden_size": hidden_size,
            "compute_dtype": compute_dtype}


# --------------------------------------------------------------------------- #
# Wrapper
# --------------------------------------------------------------------------- #
def attention_gru_cell(fact, c, g, prepared, *, block_b=256,
                       vmem_budget_bytes=40 << 20):
    """fact: (B, input_size), c: (B, hidden), g: (B,). Returns (B, hidden)."""
    B, H = c.shape
    I = prepared["input_size"]
    assert H == prepared["hidden_size"]
    assert fact.shape == (B, I) and g.shape == (B,)
    S, W3 = prepared["gate_stride"], prepared["W3"]
    wf, wc, bias = prepared["wf"], prepared["wc"], prepared["bias"]
    cdt = prepared["compute_dtype"]
    GW = min(H, 128)                                 # lanes carried for g

    resident = (wf.size + wc.size) * wf.dtype.itemsize + bias.size * 4
    big_slab = resident > (2 << 20)                  # single-buffer big slabs

    # Batch tile: one whole-batch block when it fits, else 256-row tiles
    # (full MXU height on v6e/v7x), auto-shrunk to honor the VMEM budget.
    def vmem_estimate(tb):
        io_tiles = tb * (I + H + GW + H) * 4         # f32 worst case, in + out
        slabs = resident * (1 if big_slab else 2)
        return 2 * io_tiles + slabs + tb * W3 * 4    # dbl-buffered tiles + z

    TB = B if B <= block_b else block_b
    while TB > 8 and vmem_estimate(TB) > vmem_budget_bytes:
        TB = max(8, TB // 2)

    Bp = B if B <= TB else _round_up(B, TB)
    if Bp != B:
        pad = Bp - B
        fact = jnp.pad(fact, ((0, pad), (0, 0)))
        c_in = jnp.pad(c, ((0, pad), (0, 0)))
        g_in = jnp.pad(g, ((0, pad),))
    else:
        c_in, g_in = c, g
    g2 = jnp.broadcast_to(g_in.astype(jnp.float32)[:, None], (Bp, GW))

    def row_spec(width):
        return pl.BlockSpec((TB, width), lambda i: (i, 0))

    def resident_spec(shape):
        if big_slab:
            return pl.BlockSpec(shape, lambda i: (0, 0),
                                pipeline_mode=pl.Buffered(1))
        return pl.BlockSpec(shape, lambda i: (0, 0))

    compiler_kwargs = dict(dimension_semantics=("parallel",))
    est = vmem_estimate(TB)
    if est > (16 << 20):   # raise scoped VMEM only when the default would trip
        compiler_kwargs["vmem_limit_bytes"] = int(min(est * 5 // 4 + (4 << 20),
                                                      100 << 20))

    kernel = functools.partial(attention_gru_cell_kernel, hidden_size=H,
                               gate_stride=S, compute_dtype=cdt)

    out = pl.pallas_call(
        kernel,
        out_shape=jax.ShapeDtypeStruct((Bp, H), c.dtype),
        grid_spec=pltpu.PrefetchScalarGridSpec(
            num_scalar_prefetch=0,
            grid=(Bp // TB,),
            in_specs=[
                row_spec(I),                         # fact
                row_spec(H),                         # c
                row_spec(GW),                        # g (lane-broadcast, no width-1)
                resident_spec((I, W3)),              # fact-slab (VMEM-resident)
                resident_spec((H, W3)),              # c-slab    (VMEM-resident)
                resident_spec((1, W3)),              # f32 bias row
            ],
            out_specs=row_spec(H),
        ),
        compiler_params=pltpu.CompilerParams(**compiler_kwargs),
    )(fact, c_in, g2, wf, wc, bias)

    return out if Bp == B else out[:B]

    # TODO(synk): when the DMN fact loop is the hot path, add a sequence entry
    # point with the time loop inside the kernel (time grid axis "arbitrary",
    # c carried in VMEM scratch) so the slabs are DMA'd once per sequence.


# --------------------------------------------------------------------------- #
# Init + pure-JAX reference (PyTorch semantics)
# --------------------------------------------------------------------------- #
def uniform_init(key, shape, fan):
    bound = 1.0 / jnp.sqrt(jnp.float32(fan))
    return jax.random.uniform(key, shape, jnp.float32, -bound, bound)


def make_params(key, input_size, hidden_size):
    ks = jax.random.split(key, 6)
    return {
        "Wr":   uniform_init(ks[0], (hidden_size, input_size), hidden_size),
        "Ur_w": uniform_init(ks[1], (hidden_size, hidden_size), hidden_size),
        "Ur_b": uniform_init(ks[2], (hidden_size,), hidden_size),
        "W_w":  uniform_init(ks[3], (hidden_size, input_size), hidden_size),
        "W_b":  uniform_init(ks[4], (hidden_size,), hidden_size),
        "U":    uniform_init(ks[5], (hidden_size, hidden_size), hidden_size),
    }


def reference_forward(fact, c, g, p):
    r = jax.nn.sigmoid(fact @ p["Wr"].T + c @ p["Ur_w"].T + p["Ur_b"])
    h_tilda = jnp.tanh(fact @ p["W_w"].T + p["W_b"] + r * (c @ p["U"].T))
    g = g[:, None]
    return g * h_tilda + (1.0 - g) * c


# --------------------------------------------------------------------------- #
if __name__ == "__main__":
    batch, input_size, hidden_size = 4, 32, 32

    key = jax.random.PRNGKey(0)
    k_fact, k_c, k_g, k_params = jax.random.split(key, 4)

    fact = jax.random.normal(k_fact, (batch, input_size), jnp.float32)
    c = jax.random.normal(k_c, (batch, hidden_size), jnp.float32)
    g = jax.random.uniform(k_g, (batch,), jnp.float32)
    params = make_params(k_params, input_size, hidden_size)

    prepared = prepare_params(params, input_size, hidden_size)

    fwd = jax.jit(lambda f, cc, gg: attention_gru_cell(f, cc, gg, prepared))
    out = jax.block_until_ready(fwd(fact, c, g))

    ref = reference_forward(fact, c, g, params)
    assert out.shape == (batch, hidden_size)
    assert out.dtype == c.dtype
    # bf16 MXU operands (f32 accumulation, f32 biases) -> small bounded error.
    max_err = float(jnp.max(jnp.abs(out - ref)))
    assert max_err < 3e-2, f"mismatch vs reference: max abs err = {max_err}"

    print("KERNEL_OK")
</pallas_src>

<mosaic_0001>
module attributes {stable_mosaic.version = 11 : i64} {
  func.func @attention_gru_cell_kernel(%arg0: i32, %arg1: memref<4x32xf32, #tpu.memory_space<vmem>>, %arg2: memref<4x32xf32, #tpu.memory_space<vmem>>, %arg3: memref<4x32xf32, #tpu.memory_space<vmem>>, %arg4: memref<32x128xbf16, #tpu.memory_space<vmem>>, %arg5: memref<32x128xbf16, #tpu.memory_space<vmem>>, %arg6: memref<1x128xf32, #tpu.memory_space<vmem>>, %arg7: memref<4x32xf32, #tpu.memory_space<vmem>>) attributes {dimension_semantics = [#tpu.dimension_semantics<parallel>], iteration_bounds = array<i64: 1>, scalar_prefetch = 0 : i64, scratch_operands = 0 : i64, tpu.core_type = #tpu.core_type<tc>, window_params = [{transform_indices = @transform_0, window_bounds = array<i64: 4, 32>}, {transform_indices = @transform_1, window_bounds = array<i64: 4, 32>}, {transform_indices = @transform_2, window_bounds = array<i64: 4, 32>}, {pipeline_mode = #tpu.pipeline_mode<synchronous>, transform_indices = @transform_3, window_bounds = array<i64: 32, 128>}, {pipeline_mode = #tpu.pipeline_mode<synchronous>, transform_indices = @transform_4, window_bounds = array<i64: 32, 128>}, {pipeline_mode = #tpu.pipeline_mode<synchronous>, transform_indices = @transform_5, window_bounds = array<i64: 1, 128>}, {transform_indices = @transform_6, window_bounds = array<i64: 4, 32>}]} {
    %c0 = arith.constant 0 : index
    %c0_0 = arith.constant 0 : index
    %0 = vector.load %arg2[%c0, %c0_0] : memref<4x32xf32, #tpu.memory_space<vmem>>, vector<4x32xf32>
    %c0_1 = arith.constant 0 : index
    %c0_2 = arith.constant 0 : index
    %1 = vector.load %arg1[%c0_1, %c0_2] : memref<4x32xf32, #tpu.memory_space<vmem>>, vector<4x32xf32>
    %2 = arith.truncf %1 : vector<4x32xf32> to vector<4x32xbf16>
    %c0_3 = arith.constant 0 : index
    %c0_4 = arith.constant 0 : index
    %3 = vector.load %arg4[%c0_3, %c0_4] : memref<32x128xbf16, #tpu.memory_space<vmem>>, vector<32x128xbf16>
    %cst = arith.constant dense<0.000000e+00> : vector<4x128xf32>
    %4 = tpu.matmul %2, %3, %cst {dimension_numbers = #tpu.dot_dimension_numbers<[1], [0], [0], [1], [0, 0, 1, 1], [], []>} : vector<4x32xbf16>, vector<32x128xbf16>, vector<4x128xf32> -> vector<4x128xf32>
    %5 = arith.truncf %0 : vector<4x32xf32> to vector<4x32xbf16>
    %c0_5 = arith.constant 0 : index
    %c0_6 = arith.constant 0 : index
    %6 = vector.load %arg5[%c0_5, %c0_6] : memref<32x128xbf16, #tpu.memory_space<vmem>>, vector<32x128xbf16>
    %cst_7 = arith.constant dense<0.000000e+00> : vector<4x128xf32>
    %7 = tpu.matmul %5, %6, %cst_7 {dimension_numbers = #tpu.dot_dimension_numbers<[1], [0], [0], [1], [0, 0, 1, 1], [], []>} : vector<4x32xbf16>, vector<32x128xbf16>, vector<4x128xf32> -> vector<4x128xf32>
    %8 = arith.addf %4, %7 : vector<4x128xf32>
    %c0_8 = arith.constant 0 : index
    %c0_9 = arith.constant 0 : index
    %9 = vector.load %arg6[%c0_8, %c0_9] : memref<1x128xf32, #tpu.memory_space<vmem>>, vector<1x128xf32>
    %10 = vector.broadcast %9 : vector<1x128xf32> to vector<4x128xf32>
    %11 = arith.addf %8, %10 : vector<4x128xf32>
    %12 = vector.extract_strided_slice %11 {offsets = [0, 0], sizes = [4, 32], strides = [1, 1]} : vector<4x128xf32> to vector<4x32xf32>
    %13 = arith.negf %12 : vector<4x32xf32>
    %14 = math.exp %13 : vector<4x32xf32>
    %cst_10 = arith.constant 1.000000e+00 : f32
    %15 = vector.broadcast %cst_10 : f32 to vector<4x32xf32>
    %16 = arith.addf %15, %14 : vector<4x32xf32>
    %17 = arith.divf %15, %16 : vector<4x32xf32>
    %18 = vector.extract_strided_slice %11 {offsets = [0, 32], sizes = [4, 32], strides = [1, 1]} : vector<4x128xf32> to vector<4x32xf32>
    %19 = vector.extract_strided_slice %11 {offsets = [0, 64], sizes = [4, 32], strides = [1, 1]} : vector<4x128xf32> to vector<4x32xf32>
    %20 = arith.mulf %17, %19 : vector<4x32xf32>
    %21 = arith.addf %18, %20 : vector<4x32xf32>
    %22 = math.tanh %21 : vector<4x32xf32>
    %c0_11 = arith.constant 0 : index
    %c0_12 = arith.constant 0 : index
    %23 = vector.load %arg3[%c0_11, %c0_12] : memref<4x32xf32, #tpu.memory_space<vmem>>, vector<4x32xf32>
    %24 = arith.subf %22, %0 : vector<4x32xf32>
    %25 = arith.mulf %23, %24 : vector<4x32xf32>
    %26 = arith.addf %0, %25 : vector<4x32xf32>
    %c0_13 = arith.constant 0 : index
    %c0_14 = arith.constant 0 : index
    %27 = vector.load %arg7[%c0_13, %c0_14] : memref<4x32xf32, #tpu.memory_space<vmem>>, vector<4x32xf32>
    tpu.vector_store %arg7[%c0_13, %c0_14], %26 {strides = array<i32>} : memref<4x32xf32, #tpu.memory_space<vmem>>, vector<4x32xf32>,
    return
  }
  func.func @transform_0(%arg0: i32) -> (i32, i32) {
    %c0_i32 = arith.constant 0 : i32
    %c0_i32_0 = arith.constant 0 : i32
    return %arg0, %c0_i32 : i32, i32
  }
  func.func @transform_1(%arg0: i32) -> (i32, i32) {
    %c0_i32 = arith.constant 0 : i32
    %c0_i32_0 = arith.constant 0 : i32
    return %arg0, %c0_i32 : i32, i32
  }
  func.func @transform_2(%arg0: i32) -> (i32, i32) {
    %c0_i32 = arith.constant 0 : i32
    %c0_i32_0 = arith.constant 0 : i32
    return %arg0, %c0_i32 : i32, i32
  }
  func.func @transform_3(%arg0: i32) -> (i32, i32) {
    %c0_i32 = arith.constant 0 : i32
    %c0_i32_0 = arith.constant 0 : i32
    %c0_i32_1 = arith.constant 0 : i32
    return %c0_i32, %c0_i32_0 : i32, i32
  }
  func.func @transform_4(%arg0: i32) -> (i32, i32) {
    %c0_i32 = arith.constant 0 : i32
    %c0_i32_0 = arith.constant 0 : i32
    %c0_i32_1 = arith.constant 0 : i32
    return %c0_i32, %c0_i32_0 : i32, i32
  }
  func.func @transform_5(%arg0: i32) -> (i32, i32) {
    %c0_i32 = arith.constant 0 : i32
    %c0_i32_0 = arith.constant 0 : i32
    %c0_i32_1 = arith.constant 0 : i32
    return %c0_i32, %c0_i32_0 : i32, i32
  }
  func.func @transform_6(%arg0: i32) -> (i32, i32) {
    %c0_i32 = arith.constant 0 : i32
    %c0_i32_0 = arith.constant 0 : i32
    return %arg0, %c0_i32 : i32, i32
  }
}

</mosaic_0001>

<bundles_post_ra>
// kernel: _lambda_.1
= control target key start
LH: loop header
LB: loop body
LE: loop exit
PB: predicated region body
PF: predicated region fallthrough
CT: control target
= control target key end

     0   :  { %11 = vsyncpa [#allocation3], 0  ;;  %s400_s0 = inlined_call_operand.vmem [shape: f32[4,32], index: 0, kind: input, shape index: {}]   ;;  %s401_s1 = inlined_call_operand.vmem [shape: f32[4,32], index: 1, kind: input, shape index: {}]   ;;  %s402_s2 = inlined_call_operand.vmem [shape: f32[4,32], index: 2, kind: input, shape index: {}]   ;;  %s403_s3 = inlined_call_operand.hbm [shape: bf16[32,128], index: 3, kind: input, shape index: {}]   ;;  %s404_s4 = inlined_call_operand.vmem [shape: bf16[32,128], index: 4, kind: input, shape index: {}]   ;;  %s405_s5 = inlined_call_operand.vmem [shape: f32[1,128], index: 5, kind: input, shape index: {}]   ;;  %s406_s6 = inlined_call_operand.hbm [shape: f32[4,32], index: 6, kind: output, shape index: {}]  }
   0x1   :  { %12 = vsyncpa [#allocation4], 0  ;;  %s312_s21 = smov [#allocation2]   ;;  %s264_s25 = scalar_lea.hbm %s403_s3, 256 }
   0x2   :  { %s24_s22 = sshll.u32 %s312_s21, 4  ;;  %p265_p0 = scmp.ne.s32.totalorder %s403_s3, %s264_s25  ;;  %s25_s22 = int_to_ptr.vmem [resolvable:$true] %s24_s22 }
   0x3   :  { %p268_p1 = scmp.lt.u32.totalorder %s264_s25, %s403_s3 }
   0x5   :  { %p270_p2 = pnand %p268_p1, %p265_p0 }
   0x7   :  { %273 = shalt.err (!%p270_p2)
}
   0x8   :  { %s274_s30 = scalar_lea.vmem %s25_s22, 256  ;;  %p279_p4 = scmp.lt.s32.totalorder %s25_s22, %s25_s22 }
   0x9   :  { %p275_p3 = scmp.ne.s32.totalorder %s25_s22, %s274_s30  ;;  %p280_p5 = scmp.lt.s32.totalorder %s274_s30, %s274_s30 }
   0xb   :  { %p281_p6 = por %p280_p5, %p279_p4 }
   0xd   :  { %p282_p7 = pnand %p281_p6, %p275_p3 }
   0xf   :  { %285 = shalt.err (!%p282_p7)
}
  0x10   :  { %s313_s7 = smov 64   ;;  %s314_s8 = smov 4  }
  0x11   :  { %30 = dma.hbm_to_vmem [thread:$0]  %s403_s3, 256, %s25_s22, [#allocation3], %s313_s7, %s313_s7, %s314_s8  }
  0x12   :  { %308 = dma.done.wait [#allocation3], 256  }
  0x13   :  { %309 = vsyncadd [#allocation3], 4294967040  ;;  %v315_v0 = vmov 0.0   ;;  %vm316_vm0 = vmmov 0   ;;  %v254_v1 = vld [vmem:[%s404_s4] sm:$0xff]   ;;  %v256_v3 = vld [vmem:[%s404_s4 + $0x8] sm:$0xff]  }
  0x14   :  { %230 = vmatprep.subr.bf16.mxu0 %v315_v0  ;;  %238 = vmatprep.subr.bf16.mxu1 %v315_v0  ;;  %v255_v2 = vld [vmem:[#allocation2] sm:$0xff]   ;;  %v257_v4 = vld [vmem:[#allocation2 + $0x8] sm:$0xff]   ;;  %vm63_vm1 = vcmask 261120   ;;  %s317_s4 = smov 32   ;;  %s319_s20 = smov [#allocation5]   ;;  %vm199_vm2 = vcmask 257024  }
  0x15   :  { %234 = vmatprep.mubr.msk.bf16.mxu0 %vm316_vm0, %v315_v0  ;;  %242 = vmatprep.mubr.msk.bf16.mxu1 %vm316_vm0, %v315_v0  ;;  %v39_v5 = vld [vmem:[%s401_s1] sm:$0xf]  ;;  %s207_s21 = sshll.u32 %s319_s20, 4  ;;  %s208_s21 = int_to_ptr.vmem [resolvable:$true] %s207_s21 }
  0x16   :  { %231 = vmatpush3.bf16.msra.mxu0 %v254_v1  ;;  %239 = vmatpush3.bf16.msra.mxu1 %v255_v2  ;;  %v40_v6 = vld [vmem:[%s400_s0] sm:$0xf]  ;;  %v46_v7 = vpack.c.bf16 %v39_v5, %v39_v5  ;;  %s318_s0 = smov 96   ;;  %s286_s22 = scalar_lea.vmem %s208_s21, 64 }
  0x17   :  { %232 = vmatprep.subr.bf16.mxu0 %v315_v0  ;;  %240 = vmatprep.subr.bf16.mxu1 %v315_v0  ;;  %v41_v8 = vpack.c.bf16 %v40_v6, %v40_v6  ;;  %v222_v11 = vld [vmem:[%s405_s5] ss:$0 sm:$0xff]  ;;  %p287_p8 = scmp.ne.s32.totalorder %s208_s21, %s286_s22  ;;  %p291_p9 = scmp.lt.s32.totalorder %s208_s21, %s208_s21 }
  0x18   :  { %189 = vrot.lane.b32.xlu1 %v39_v5, %s317_s4  ;;  %v187_v31 = vld [vmem:[%s402_s2] sm:$0xf]  ;;  %p292_p10 = scmp.lt.s32.totalorder %s286_s22, %s286_s22 }
  0x1a   :  { %233 = vmatpush3.bf16.msra.mxu0 %v256_v3  ;;  %241 = vmatpush3.bf16.msra.mxu1 %v257_v4  ;;  %p293_p11 = por %p292_p10, %p291_p9 }
  0x1c   :  { %p294_p12 = pnand %p293_p11, %p287_p8 }
  0x1d   :  { %235 = vmatmul.mubr.msk.bf16.vlgmr.msra.gmra.mrb[0].mxu0 %vm63_vm1, %v46_v7  ;;  %243 = vmatmul.mubr.msk.bf16.vlgmr.msra.gmra.mrb[0].mxu1 %vm63_vm1, %v41_v8 }
  0x8a   :  { %v190_v28 = vpop.permute.xlu1 %189 }
  0xf0   :  { %v101_v9 = vpop.f32.mrb[0].mxu0  ;;  %v156_v10 = vpop.f32.mrb[0].mxu1 }
  0xf1   :  { %v236_v12 = vpop.f32.mrb[1].mxu0  ;;  %v157_v13 = vadd.f32 %v156_v10, %v101_v9  ;;  %v244_v14 = vpop.f32.mrb[1].mxu1 }
  0xf2   :  { %v104_v15 = vpop.f32.mrb[2].mxu0  ;;  %v159_v16 = vpop.f32.mrb[2].mxu1 }
  0xf3   :  { %v237_v17 = vpop.f32.mrb[3].mxu0  ;;  %v169_v18 = vadd.f32 %v222_v11, %v157_v13  ;;  %v245_v19 = vpop.f32.mrb[3].mxu1 }
  0xf5   :  { %177 = vrot.lane.b32.xlu0 %v169_v18, %s313_s7  ;;  %v223_v20 = vmul.f32 -1.442695, %v169_v18 }
  0xf7   :  { %258 = vpow2.f32 %v223_v20 }
 0x101   :  { %v259_v21 = vpop.eup %258 }
 0x102   :  { %v173_v22 = vadd.f32 1.0, %v259_v21 }
 0x104   :  { %260 = vrcp.f32 %v173_v22 }
 0x10e   :  { %v261_v23 = vpop.eup %260 }
 0x167   :  { %v178_v24 = vpop.permute.xlu0 %177 }
 0x168   :  { %v180_v25 = vmul.f32 %v261_v23, %v178_v24 }
 0x16a   :  { %182 = vrot.lane.b32.xlu0 %v180_v25, %s317_s4 }
 0x1dc   :  { %v183_v26 = vpop.permute.xlu0 %182 }
 0x1dd   :  { %v185_v27 = vadd.f32 %v183_v26, %v169_v18 }
 0x1df   :  { %262 = vtanh.f32 %v185_v27 }
 0x1e9   :  { %v263_v29 = vpop.eup %262 }
 0x1ea   :  { %v192_v30 = vsub.f32 %v263_v29, %v190_v28 }
 0x1ec   :  { %194 = vrot.lane.b32.xlu1 %v192_v30, %s318_s0 }
 0x25e   :  { %v195_v32 = vpop.permute.xlu1 %194 }
 0x25f   :  { %v197_v33 = vmul.f32 %v195_v32, %v187_v31 }
 0x261   :  { %v198_v34 = vadd.f32 %v197_v33, %v39_v5 }
 0x263   :  { %200 = vst.msk [vmem:[#allocation5] sm:$0xf] %vm199_vm2, %v198_v34 }
 0x264   :  { %297 = shalt.err (!%p294_p12)
}
 0x265   :  { %s298_s25 = scalar_lea.hbm %s406_s6, 64 }
 0x266   :  { %p299_p13 = scmp.ne.s32.totalorder %s406_s6, %s298_s25  ;;  %p302_p0 = scmp.lt.u32.totalorder %s298_s25, %s406_s6 }
 0x268   :  { %p304_p1 = pnand %p302_p0, %p299_p13 }
 0x26a   :  { %307 = shalt.err (!%p304_p1)
}
 0x26b   :  { %210 = dma.vmem_to_hbm [thread:$0]  %s208_s21, 64, %s406_s6, [#allocation4]  }
 0x26c   :  { %310 = dma.done.wait [#allocation4], 64  }
 0x26d   :  { %311 = vsyncadd [#allocation4], 4294967232 }
 0x26e   :  { %214 = vsyncpa [#allocation3], 1 }
 0x26f   :  { %215 = vsyncpa [#allocation4], 1 }

</bundles_post_ra>
